<compile_context>
chip_gen: v7x
topology: tpu7x:2x2x1
jax: 0.10.0
libtpu: 0.0.40
codegen_flags: <defaults>
</compile_context>

<pallas_src>
import functools

import jax
import jax.numpy as jnp
from jax import lax
from jax.experimental import pallas as pl
from jax.experimental.pallas import tpu as pltpu


def _round_up(x, m):
    return ((x + m - 1) // m) * m


def _round_down(x, m):
    return (x // m) * m


def _vmem_budget_bytes():
    """Generation-aware usable VMEM budget (leave headroom for XLA / other TC)."""
    cap = 128 << 20
    try:
        info = pltpu.get_tpu_info()
        cap = int(getattr(info, "vmem_capacity_bytes", cap) or cap)
    except Exception:
        pass
    # v7x: 64 MiB per TensorCore -> stay well inside it; v5e/v6e: 128 MiB.
    return (48 << 20) if cap <= (96 << 20) else (100 << 20)


def _upconv_kernel(x_ref, w_ref, b_ref, o_ref):
    # x_ref: (1, C_in, tpix)  input pixels, channels on the sublane axis
    # w_ref: (C_in, Ncols)    columns ordered (ki, kj, co)
    # b_ref: (1, Ncols) f32
    # o_ref: (1, tpix, Ncols)
    acc = lax.dot_general(
        x_ref[0], w_ref[...],
        dimension_numbers=(((0,), (0,)), ((), ())),  # contract C_in (transposed LHS on MXU)
        preferred_element_type=jnp.float32,
    )
    o_ref[0] = (acc + b_ref[...]).astype(o_ref.dtype)


def upconv_pallas(x_nchw, weight, bias, *, compute_dtype=None, out_dtype=None,
                  max_pixel_tile=2048):
    """ConvTranspose2d(kernel_size=2, stride=2) forward.

    x_nchw: (N, C_in, H, W)
    weight: (C_in, C_out, 2, 2)   -- PyTorch ConvTranspose2d layout
    bias:   (C_out,)
    returns (N, C_out, 2H, 2W) in `out_dtype` (default: x.dtype)
    """
    N, C_in, H, W = x_nchw.shape
    C_out = weight.shape[1]
    compute_dtype = jnp.dtype(compute_dtype) if compute_dtype is not None else x_nchw.dtype
    out_dtype = jnp.dtype(out_dtype) if out_dtype is not None else x_nchw.dtype

    P = H * W
    Ncols = 4 * C_out
    # Lane-dense output stores only when the padding overhead is small (<= 25%);
    # otherwise keep exact columns and accept masked vst (far cheaper than
    # writing padded HBM bytes on the dominant tensor).
    Ncols_pad = _round_up(Ncols, 128)
    Ncols_out = Ncols_pad if Ncols_pad * 4 <= Ncols * 5 else Ncols

    in_item = jnp.dtype(compute_dtype).itemsize
    out_item = jnp.dtype(out_dtype).itemsize

    # ---- VMEM-budget-derived pixel tile -------------------------------------
    budget = _vmem_budget_bytes()
    fixed = 2 * (C_in * Ncols_out * in_item + Ncols_out * 4) + (2 << 20)  # resident w/b (+slack)
    row_cost = (2 * C_in * in_item            # x tile, double-buffered
                + 2 * Ncols_out * out_item    # out tile, double-buffered
                + Ncols_out * 4)              # live f32 accumulator
    max_rows = max(128, min(max_pixel_tile, (budget - fixed) // max(row_cost, 1)))

    if P % 128 == 0:
        tpix = max(128, min(_round_down(max_rows, 128), P))
        # prefer >= 8 total grid steps (v7x megacore sharding + DMA pipelining)
        want_tiles = max(1, -(-8 // N))
        if P // tpix < want_tiles:
            tpix = max(128, _round_down(P // want_tiles, 128))
        while P % tpix:                       # make the tile divide P exactly
            tpix -= 128
    elif P * row_cost + fixed <= budget:
        tpix = P                              # odd/small spatial size: one full-extent tile
    else:
        tpix = max(128, _round_down(max_rows, 128))
        while P % tpix and tpix > 128:
            tpix -= 128
        # If nothing divides, the ragged last tile relies on Pallas edge
        # handling: out-of-bounds input rows produce garbage rows that land in
        # the output padding region and are sliced off below.
    num_tiles = -(-P // tpix)
    P_pad = num_tiles * tpix

    # ---- glue (all free / tiny): no HBM transpose of x ----------------------
    x3 = x_nchw.reshape(N, C_in, P).astype(compute_dtype)   # metadata-only reshape

    # weight columns ordered (ki, kj, co); bias replicated per tap
    w_flat = jnp.transpose(weight, (0, 2, 3, 1)).reshape(C_in, Ncols).astype(compute_dtype)
    b_flat = jnp.tile(bias.astype(jnp.float32), 4).reshape(1, Ncols)
    if Ncols_out != Ncols:
        w_flat = jnp.pad(w_flat, ((0, 0), (0, Ncols_out - Ncols)))
        b_flat = jnp.pad(b_flat, ((0, 0), (0, Ncols_out - Ncols)))

    grid = (N, num_tiles)

    vmem_needed = fixed + tpix * row_cost
    vmem_limit = int(min(budget, max(32 << 20, vmem_needed + (8 << 20))))

    cost = pl.CostEstimate(
        flops=2 * N * P * C_in * Ncols,
        transcendentals=0,
        bytes_accessed=(x3.size * in_item + w_flat.size * in_item
                        + b_flat.size * 4 + N * P * Ncols * out_item),
    )

    y = pl.pallas_call(
        _upconv_kernel,
        out_shape=jax.ShapeDtypeStruct((N, P_pad, Ncols_out), out_dtype),
        grid_spec=pltpu.PrefetchScalarGridSpec(
            num_scalar_prefetch=0,
            grid=grid,
            in_specs=[
                pl.BlockSpec((1, C_in, tpix), lambda n, t: (n, 0, t)),
                # constant index maps -> weight/bias stay resident across the grid
                pl.BlockSpec((C_in, Ncols_out), lambda n, t: (0, 0)),
                pl.BlockSpec((1, Ncols_out), lambda n, t: (0, 0)),
            ],
            out_specs=pl.BlockSpec((1, tpix, Ncols_out), lambda n, t: (n, t, 0)),
        ),
        compiler_params=pltpu.CompilerParams(
            dimension_semantics=("parallel", "parallel"),
            vmem_limit_bytes=vmem_limit,
        ),
        cost_estimate=cost,
    )(x3, w_flat, b_flat)

    # ---- epilogue (one fused XLA transpose, runs in out_dtype) --------------
    y = y[:, :P, :Ncols]                                 # drop row/column padding (no-op if exact)
    y = y.reshape(N, H, W, 2, 2, C_out)                  # (n, i, j, ki, kj, co)
    y = jnp.transpose(y, (0, 5, 1, 3, 2, 4))             # (n, co, i, ki, j, kj)
    return y.reshape(N, C_out, 2 * H, 2 * W)


def upconv_reference(x_nchw, weight, bias):
    # pure-JAX reference of ConvTranspose2d(k=2, s=2); weight is (C_in, C_out, 2, 2)
    y = jnp.einsum("ncij,cdkl->ndikjl", x_nchw, weight)
    N, C_out, H, _, W, _ = y.shape
    y = y.reshape(N, C_out, 2 * H, 2 * W)
    return y + bias[None, :, None, None]


if __name__ == "__main__":
    key = jax.random.PRNGKey(0)
    k1, k2, k3 = jax.random.split(key, 3)

    N, C_in, H, W = 2, 4, 16, 16
    C_out = 2

    x = jax.random.normal(k1, (N, C_in, H, W), dtype=jnp.float32)
    # shapes match nn.ConvTranspose2d(ch_in, ch_out, kernel_size=2, stride=2)
    weight = jax.random.normal(k2, (C_in, C_out, 2, 2), dtype=jnp.float32) * 0.1
    bias = jax.random.normal(k3, (C_out,), dtype=jnp.float32) * 0.1

    ref = upconv_reference(x, weight, bias)

    # default path: f32 compute / f32 output (matches the PyTorch module dtype)
    out = jax.block_until_ready(jax.jit(upconv_pallas)(x, weight, bias))
    assert out.shape == (N, C_out, 2 * H, 2 * W), out.shape
    assert out.dtype == x.dtype, out.dtype
    err = float(jnp.max(jnp.abs(out - ref)))
    assert jnp.allclose(out, ref, atol=5e-3, rtol=5e-3), f"f32 mismatch vs reference (max err {err})"

    # opt-in low-precision path: bf16 operands + bf16 output (halves HBM traffic)
    upconv_bf16 = jax.jit(functools.partial(
        upconv_pallas, compute_dtype=jnp.bfloat16, out_dtype=jnp.bfloat16))
    out_bf16 = jax.block_until_ready(upconv_bf16(x, weight, bias))
    err_bf16 = float(jnp.max(jnp.abs(out_bf16.astype(jnp.float32) - ref)))
    assert jnp.allclose(out_bf16.astype(jnp.float32), ref, atol=5e-2, rtol=5e-2), \
        f"bf16 mismatch vs reference (max err {err_bf16})"

    print("KERNEL_OK")
</pallas_src>

<mosaic_0001>
module attributes {stable_mosaic.version = 11 : i64} {
  func.func @_upconv_kernel(%arg0: i32, %arg1: i32, %arg2: memref<1x4x128xf32, #tpu.memory_space<vmem>>, %arg3: memref<4x8xf32, #tpu.memory_space<vmem>>, %arg4: memref<1x8xf32, #tpu.memory_space<vmem>>, %arg5: memref<1x128x8xf32, #tpu.memory_space<vmem>>) attributes {dimension_semantics = [#tpu.dimension_semantics<parallel>, #tpu.dimension_semantics<parallel>], iteration_bounds = array<i64: 2, 2>, scalar_prefetch = 0 : i64, scratch_operands = 0 : i64, tpu.core_type = #tpu.core_type<tc>, window_params = [{transform_indices = @transform_0, window_bounds = array<i64: 1, 4, 128>}, {pipeline_mode = #tpu.pipeline_mode<synchronous>, transform_indices = @transform_1, window_bounds = array<i64: 4, 8>}, {pipeline_mode = #tpu.pipeline_mode<synchronous>, transform_indices = @transform_2, window_bounds = array<i64: 1, 8>}, {transform_indices = @transform_3, window_bounds = array<i64: 1, 128, 8>}]} {
    %c0 = arith.constant 0 : index
    %c0_0 = arith.constant 0 : index
    %c0_1 = arith.constant 0 : index
    %0 = vector.load %arg2[%c0, %c0_0, %c0_1] : memref<1x4x128xf32, #tpu.memory_space<vmem>>, vector<1x4x128xf32>
    %1 = vector.shape_cast %0 : vector<1x4x128xf32> to vector<4x128xf32>
    %c0_2 = arith.constant 0 : index
    %c0_3 = arith.constant 0 : index
    %2 = vector.load %arg3[%c0_2, %c0_3] : memref<4x8xf32, #tpu.memory_space<vmem>>, vector<4x8xf32>
    %cst = arith.constant dense<0.000000e+00> : vector<128x8xf32>
    %3 = tpu.matmul %1, %2, %cst {dimension_numbers = #tpu.dot_dimension_numbers<[0], [0], [1], [1], [0, 1, 1, 1], [], []>} : vector<4x128xf32>, vector<4x8xf32>, vector<128x8xf32> -> vector<128x8xf32>
    %c0_4 = arith.constant 0 : index
    %c0_5 = arith.constant 0 : index
    %4 = vector.load %arg4[%c0_4, %c0_5] : memref<1x8xf32, #tpu.memory_space<vmem>>, vector<1x8xf32>
    %5 = vector.broadcast %4 : vector<1x8xf32> to vector<128x8xf32>
    %6 = arith.addf %3, %5 : vector<128x8xf32>
    %c0_6 = arith.constant 0 : index
    %c0_7 = arith.constant 0 : index
    %c0_8 = arith.constant 0 : index
    %7 = vector.load %arg5[%c0_6, %c0_7, %c0_8] : memref<1x128x8xf32, #tpu.memory_space<vmem>>, vector<1x128x8xf32>
    %8 = vector.shape_cast %7 : vector<1x128x8xf32> to vector<128x8xf32>
    %9 = vector.shape_cast %6 : vector<128x8xf32> to vector<1x128x8xf32>
    tpu.vector_store %arg5[%c0_6, %c0_7, %c0_8], %9 {strides = array<i32>} : memref<1x128x8xf32, #tpu.memory_space<vmem>>, vector<1x128x8xf32>,
    return
  }
  func.func @transform_0(%arg0: i32, %arg1: i32) -> (i32, i32, i32) {
    %c0_i32 = arith.constant 0 : i32
    %c0_i32_0 = arith.constant 0 : i32
    return %arg0, %c0_i32, %arg1 : i32, i32, i32
  }
  func.func @transform_1(%arg0: i32, %arg1: i32) -> (i32, i32) {
    %c0_i32 = arith.constant 0 : i32
    %c0_i32_0 = arith.constant 0 : i32
    %c0_i32_1 = arith.constant 0 : i32
    return %c0_i32, %c0_i32_0 : i32, i32
  }
  func.func @transform_2(%arg0: i32, %arg1: i32) -> (i32, i32) {
    %c0_i32 = arith.constant 0 : i32
    %c0_i32_0 = arith.constant 0 : i32
    %c0_i32_1 = arith.constant 0 : i32
    return %c0_i32, %c0_i32_0 : i32, i32
  }
  func.func @transform_3(%arg0: i32, %arg1: i32) -> (i32, i32, i32) {
    %c0_i32 = arith.constant 0 : i32
    %c0_i32_0 = arith.constant 0 : i32
    return %arg0, %arg1, %c0_i32 : i32, i32, i32
  }
}

</mosaic_0001>

<bundles_post_ra>
// kernel: tile.8
= control target key start
LH: loop header
LB: loop body
LE: loop exit
PB: predicated region body
PF: predicated region fallthrough
CT: control target
= control target key end

     0   :  { %s22_s0 = inlined_call_operand.vmem [shape: f32[2], index: 0, kind: input, shape index: {}]   ;;  %s23_s1 = inlined_call_operand.vmem [shape: f32[4,2], index: 1, kind: output, shape index: {}]  }
   0x1   :  { %v4_v0 = vld [vmem:[%s22_s0] ss:$0 sm:$0xff] }
   0x2   :  { %5 = vst [vmem:[%s23_s1] sm:$0xf] %v4_v0 }

// kernel: tile.9
= control target key start
LH: loop header
LB: loop body
LE: loop exit
PB: predicated region body
PF: predicated region fallthrough
CT: control target
= control target key end

     0   :  { %vm7_vm0 = vcmask 15360   ;;  %s37_s8 = smov 2   ;;  %s38_s9 = smov 4   ;;  %vm13_vm1 = vcmask 64560   ;;  %vm19_vm2 = vcmask 48160   ;;  %vm25_vm3 = vcmask 31760   ;;  %s55_s0 = inlined_call_operand.vmem [shape: f32[4,2], index: 0, kind: input, shape index: {}]   ;;  %s56_s1 = inlined_call_operand.vmem [shape: f32[1,8], index: 1, kind: output, shape index: {}]  }
   0x1   :  { %v4_v0 = vld [vmem:[%s55_s0] sm:$0xf]  ;;  %s36_s0 = smov 6  }
   0x2   :  { %5 = vst [vmem:[#allocation1] sm:$0xf] %v4_v0 }
   0x9   :  { %v10_v1 = vld [vmem:[#allocation1 + $0x3] sm:$0x1]   ;;  %v22_v2 = vld [vmem:[#allocation1 + $0x1] sm:$0x1]   ;;  %v6_v3 = vld [vmem:[#allocation1] sm:$0x1]  }
   0xa   :  { %11 = vrot.lane.b32.xlu0 %v10_v1, %s36_s0  ;;  %23 = vrot.lane.b32.xlu1 %v22_v2, %s37_s8  ;;  %v16_v4 = vld [vmem:[#allocation1 + $0x2] sm:$0x1]   ;;  %8 = vst.msk [vmem:[#allocation0] sm:$0x1] %vm7_vm0, %v6_v3  }
   0xe   :  { %17 = vrot.lane.b32.xlu0 %v16_v4, %s38_s9 }
  0x7c   :  { %v12_v5 = vpop.permute.xlu0 %11   ;;  %v24_v6 = vpop.permute.xlu1 %23  }
  0x7d   :  { %14 = vst.msk [vmem:[#allocation0] sm:$0x1] %vm13_vm1, %v12_v5  }
  0x80   :  { %v18_v7 = vpop.permute.xlu0 %17  }
  0x81   :  { %20 = vst.msk [vmem:[#allocation0] sm:$0x1] %vm19_vm2, %v18_v7  }
  0x82   :  { %26 = vst.msk [vmem:[#allocation0] sm:$0x1] %vm25_vm3, %v24_v6  }
  0x89   :  { %v30_v8 = vld [vmem:[#allocation0] sm:$0x1] }
  0x8a   :  { %32 = vst [vmem:[%s56_s1] sm:$0x1] %v30_v8 }

// kernel: upconv_pallas.1
= control target key start
LH: loop header
LB: loop body
LE: loop exit
PB: predicated region body
PF: predicated region fallthrough
CT: control target
= control target key end

     0   :  { %s727_s12 = smov 0   ;;  %s729_s13 = smov 0   ;;  %s843_s0 = inlined_call_operand.vmem [shape: f32[2,4,256], index: 0, kind: input, shape index: {}]   ;;  %s844_s1 = inlined_call_operand.vmem [shape: f32[4,8], index: 1, kind: input, shape index: {}]   ;;  %s845_s2 = inlined_call_operand.vmem [shape: f32[1,8], index: 2, kind: input, shape index: {}]   ;;  %s846_s3 = inlined_call_operand.vmem [shape: f32[2,256,8], index: 3, kind: output, shape index: {}]  }
   0x1   :  { %s731_s14 = smov 0   ;;  %s733_s15 = smov 0  }
   0x2   :  { %s735_s16 = smov 0  }
   0x3 LB: > { %s22_s17 = sadd.s32 1, %s697_s14  ;;  %s25_s18 = sadd.s32 1, %s701_s15  ;;  %s705_s16 = sphi %s735_s16, %s13_s16   ;;  %s701_s15 = sphi %s733_s15, %s850_s15   ;;  %s697_s14 = sphi %s731_s14, %s849_s14   ;;  %s693_s13 = sphi %s729_s13, %s848_s13   ;;  %s689_s12 = sphi %s727_s12, %s847_s12  }
   0x4   : > { %p23_p0 = scmp.ge.s32.totalorder %s22_s17, 2  ;;  %p555_p1 = scmp.ge.s32.totalorder %s705_s16, 1 }
   0x5   : > { %p156_p2 = scmp.lt.s32.totalorder %s705_s16, 5 }
   0x6   : > { %s852_s17 = smov (%p23_p0, %s22_s17), 0  ;;  %s854_s18 = smov (!%p23_p0, %s25_s18), %s701_s15 }
   0x7   : > { %p157_p3 = pnand %p555_p1, %p156_p2  ;;  %p27_p4 = scmp.ge.s32.totalorder %s854_s18, 2 }
   0x8   : > { %p187_p5 = scmp.lt.s32.totalorder (!%p157_p3), %s693_s13, 1  ;;  %p189_p6 = scmp.lt.s32.totalorder (!%p157_p3), %s689_s12, 1  ;;  %v206_v1 = vld [vmem:[%s844_s1] sm:$0xf] (!%p157_p3)  ;;  %vm295_vm0 = vcmask (!%p157_p3), 1043456   ;;  %vm246_vm1 = vcmask (!%p157_p3), 31744  }
   0x9   : > { %s856_s18 = smov (%p27_p4, %s854_s18), 0  ;;  %160 = sbr.rel (%p157_p3) target bundleno = 428 (0x1ac), region = 32 }
   0xa   : > { %598 = vmatprep.subr.msk.mxu0 (!%p157_p3), %vm295_vm0, %v206_v1  ;;  %624 = vmatprep.subr.msk.mxu1 (!%p157_p3), %vm295_vm0, %v206_v1  ;;  %s558_s28 = sshll.u32 (!%p157_p3), %s689_s12, 4  ;;  %v561_v18 = vld [vmem:[%s845_s2] ss:$0 sm:$0xff] (!%p157_p3)  ;;  %vm444_vm2 = vcmask (!%p157_p3), 64512  }
   0xb   : > { %599 = vmatpush3.msk.msra.mxu0 (!%p157_p3), %vm295_vm0, %v206_v1  ;;  %625 = vmatpush3.msk.msra.mxu1 (!%p157_p3), %vm295_vm0, %v206_v1  ;;  %p198_p7 = scmp.lt.s32.totalorder (!%p157_p3), %s558_s28, 31 }
  0x10   : > { %s858_s13 = smov (!%p187_p5, %s693_s13), 1  ;;  %s860_s28 = smov (!%p198_p7, %s558_s28), 31 }
  0x11   : > { %s190_s19 = scalar_select %p189_p6, %s689_s12, 1 }
  0x12   : > { %s556_s20 = sshll.u32 %s858_s13, 1  ;;  %s559_s29 = sshll.u32 %s858_s13, 5 }
  0x13   : > { %s192_s21 = sadd.s32 %s556_s20, %s190_s19  ;;  %s201_s30 = sadd.s32 %s559_s29, %s860_s28 }
  0x14   : > { %s557_s22 = sshll.u32 %s192_s21, 2  ;;  %s560_s4 = sshll.u32 %s201_s30, 3 }
  0x15   : > { %s194_s25 = scalar_lea.vmem %s843_s0, %s557_s22  ;;  %s794_s9 = scalar_lea.vmem %s846_s3, %s560_s4 }
  0x16   : > { %v205_v0 = vld [vmem:[%s194_s25] sm:$0xf] }
  0x17   : > { %214 = vxpose.xlu0.b32.start.end [1/1] (short) %v205_v0, 128 }
  0x97   : > { %v230_v2 = vpop.trf.xlu0 }
  0x98   : > { %600 = vmatprep.mubr.msk.f32.mxu0 %vm246_vm1, %v230_v2 }
  0x9b   : > { %v231_v3 = vpop.trf.xlu0 }
  0x9c   : > { %601 = vmatmul.mubr.msk.f32.vlgmr.msra.gmra.mrb[0].mxu0 %vm246_vm1, %v231_v3 }
  0x9f   : > { %v232_v4 = vpop.trf.xlu0 }
  0xa0   : > { %603 = vmatprep.mubr.msk.f32.mxu0 %vm246_vm1, %v232_v4 }
  0xa3   : > { %v233_v5 = vpop.trf.xlu0 }
  0xa4   : > { %604 = vmatmul.mubr.msk.f32.gmra.mrb[2].mxu0 %vm246_vm1, %v233_v5 }
  0xa7   : > { %v234_v6 = vpop.trf.xlu0 }
  0xa8   : > { %606 = vmatprep.mubr.msk.f32.mxu0 %vm246_vm1, %v234_v6 }
  0xab   : > { %v235_v7 = vpop.trf.xlu0 }
  0xac   : > { %607 = vmatmul.mubr.msk.f32.gmra.mrb[4].mxu0 %vm246_vm1, %v235_v7 }
  0xaf   : > { %v236_v8 = vpop.trf.xlu0 }
  0xb0   : > { %609 = vmatprep.mubr.msk.f32.mxu0 %vm246_vm1, %v236_v8 }
  0xb3   : > { %v237_v9 = vpop.trf.xlu0 }
  0xb4   : > { %610 = vmatmul.mubr.msk.f32.gmra.mrb[6].mxu0 %vm246_vm1, %v237_v9 }
  0xb7   : > { %v238_v10 = vpop.trf.xlu0 }
  0xb8   : > { %612 = vmatprep.mubr.msk.f32.mxu1 %vm246_vm1, %v238_v10 }
  0xbb   : > { %v239_v11 = vpop.trf.xlu0 }
  0xbc   : > { %613 = vmatmul.mubr.msk.f32.vlgmr.msra.gmra.mrb[0].mxu1 %vm246_vm1, %v239_v11 }
  0xbf   : > { %v240_v12 = vpop.trf.xlu0 }
  0xc0   : > { %615 = vmatprep.mubr.msk.f32.mxu1 %vm246_vm1, %v240_v12 }
  0xc3   : > { %v241_v13 = vpop.trf.xlu0 }
  0xc4   : > { %616 = vmatmul.mubr.msk.f32.gmra.mrb[2].mxu1 %vm246_vm1, %v241_v13 }
  0xc7   : > { %v242_v14 = vpop.trf.xlu0 }
  0xc8   : > { %618 = vmatprep.mubr.msk.f32.mxu1 %vm246_vm1, %v242_v14 }
  0xcb   : > { %v243_v15 = vpop.trf.xlu0 }
  0xcc   : > { %619 = vmatmul.mubr.msk.f32.gmra.mrb[4].mxu1 %vm246_vm1, %v243_v15 }
  0xcf   : > { %v244_v16 = vpop.trf.xlu0 }
  0xd0   : > { %621 = vmatprep.mubr.msk.f32.mxu1 %vm246_vm1, %v244_v16 }
  0xd3   : > { %v245_v17 = vpop.trf.xlu0 }
  0xd4   : > { %622 = vmatmul.mubr.msk.f32.gmra.mrb[6].mxu1 %vm246_vm1, %v245_v17 }
 0x16f   : > { %v602_v19 = vpop.f32.mrb[0].mxu0 }
 0x170   : > { %v371_v20 = vadd.f32 %v602_v19, %v561_v18  ;;  %v365_v21 = vpop.f32.mrb[1].mxu0 }
 0x171   : > { %v366_v22 = vadd.f32 %v561_v18, %v365_v21 }
 0x172   : > { %446 = vst.msk [vmem:[%s794_s9 + $0x8] sm:$0xff] %vm444_vm2, %v371_v20 }
 0x173   : > { %445 = vst.msk [vmem:[%s794_s9] sm:$0xff] %vm444_vm2, %v366_v22 }
 0x177   : > { %v605_v23 = vpop.f32.mrb[2].mxu0 }
 0x178   : > { %v381_v24 = vadd.f32 %v605_v23, %v561_v18  ;;  %v375_v25 = vpop.f32.mrb[3].mxu0 }
 0x179   : > { %v376_v26 = vadd.f32 %v561_v18, %v375_v25 }
 0x17a   : > { %448 = vst.msk [vmem:[%s794_s9 + $0x18] sm:$0xff] %vm444_vm2, %v381_v24 }
 0x17b   : > { %447 = vst.msk [vmem:[%s794_s9 + $0x10] sm:$0xff] %vm444_vm2, %v376_v26 }
 0x17f   : > { %v608_v27 = vpop.f32.mrb[4].mxu0 }
 0x180   : > { %v391_v28 = vadd.f32 %v608_v27, %v561_v18  ;;  %v385_v29 = vpop.f32.mrb[5].mxu0 }
 0x181   : > { %v386_v30 = vadd.f32 %v561_v18, %v385_v29 }
 0x182   : > { %450 = vst.msk [vmem:[%s794_s9 + $0x28] sm:$0xff] %vm444_vm2, %v391_v28 }
 0x183   : > { %449 = vst.msk [vmem:[%s794_s9 + $0x20] sm:$0xff] %vm444_vm2, %v386_v30 }
 0x187   : > { %v611_v31 = vpop.f32.mrb[6].mxu0 }
 0x188   : > { %v401_v32 = vadd.f32 %v611_v31, %v561_v18  ;;  %v395_v33 = vpop.f32.mrb[7].mxu0 }
 0x189   : > { %v396_v34 = vadd.f32 %v561_v18, %v395_v33 }
 0x18a   : > { %452 = vst.msk [vmem:[%s794_s9 + $0x38] sm:$0xff] %vm444_vm2, %v401_v32 }
 0x18b   : > { %451 = vst.msk [vmem:[%s794_s9 + $0x30] sm:$0xff] %vm444_vm2, %v396_v34 }
 0x18f   : > { %v614_v35 = vpop.f32.mrb[0].mxu1 }
 0x190   : > { %v411_v36 = vadd.f32 %v614_v35, %v561_v18  ;;  %v405_v37 = vpop.f32.mrb[1].mxu1 }
 0x191   : > { %v406_v38 = vadd.f32 %v561_v18, %v405_v37 }
 0x192   : > { %454 = vst.msk [vmem:[%s794_s9 + $0x48] sm:$0xff] %vm444_vm2, %v411_v36 }
 0x193   : > { %453 = vst.msk [vmem:[%s794_s9 + $0x40] sm:$0xff] %vm444_vm2, %v406_v38 }
 0x197   : > { %v617_v39 = vpop.f32.mrb[2].mxu1 }
 0x198   : > { %v421_v40 = vadd.f32 %v617_v39, %v561_v18  ;;  %v415_v41 = vpop.f32.mrb[3].mxu1 }
 0x199   : > { %v416_v42 = vadd.f32 %v561_v18, %v415_v41 }
 0x19a   : > { %456 = vst.msk [vmem:[%s794_s9 + $0x58] sm:$0xff] %vm444_vm2, %v421_v40 }
 0x19b   : > { %455 = vst.msk [vmem:[%s794_s9 + $0x50] sm:$0xff] %vm444_vm2, %v416_v42 }
 0x19f   : > { %v620_v43 = vpop.f32.mrb[4].mxu1 }
 0x1a0   : > { %v431_v44 = vadd.f32 %v620_v43, %v561_v18  ;;  %v425_v45 = vpop.f32.mrb[5].mxu1 }
 0x1a1   : > { %v426_v46 = vadd.f32 %v561_v18, %v425_v45 }
 0x1a2   : > { %458 = vst.msk [vmem:[%s794_s9 + $0x68] sm:$0xff] %vm444_vm2, %v431_v44 }
 0x1a3   : > { %457 = vst.msk [vmem:[%s794_s9 + $0x60] sm:$0xff] %vm444_vm2, %v426_v46 }
 0x1a7   : > { %v623_v47 = vpop.f32.mrb[6].mxu1 }
 0x1a8   : > { %v441_v48 = vadd.f32 %v623_v47, %v561_v18  ;;  %v435_v49 = vpop.f32.mrb[7].mxu1 }
 0x1a9   : > { %v436_v50 = vadd.f32 %v561_v18, %v435_v49 }
 0x1aa   : > { %460 = vst.msk [vmem:[%s794_s9 + $0x78] sm:$0xff] %vm444_vm2, %v441_v48 }
 0x1ab   : > { %459 = vst.msk [vmem:[%s794_s9 + $0x70] sm:$0xff] %vm444_vm2, %v436_v50 }
 0x1ac PF: > { %s13_s16 = sadd.s32 1, %s705_s16   ;;  %s847_s12 = smov %s697_s14 }
 0x1ad   : > { %p10_p8 = scmp.ge.s32.totalorder %s13_s16, 6   ;;  %s848_s13 = smov %s701_s15 }
 0x1ae   : > { %s849_s14 = smov %s852_s17  ;;  %s850_s15 = smov %s856_s18 }
 0x1af   :  { %12 = sbr.rel (!%p10_p8) target bundleno = 3 (0x3), region = 62 }

</bundles_post_ra>
